<compile_context>
chip_gen: v5e
topology: v5e:2x2
jax: 0.10.0
libtpu: 0.0.40
codegen_flags: <defaults>
</compile_context>

<pallas_src>
import functools

import jax
import jax.numpy as jnp
from jax import lax
from jax.experimental import pallas as pl
from jax.experimental.pallas import tpu as pltpu


def _vmem_capacity_bytes(default=64 << 20):
    """Physical VMEM of the attached TPU; conservative (v7x) default if unknown."""
    try:
        info = pltpu.get_tpu_info()
        cap = int(getattr(info, "vmem_capacity_bytes", 0) or 0)
        if cap > 0:
            return cap
    except Exception:
        pass
    return default


def _excitation(mean, w1, w2t):
    """Squeeze-excitation MLP. mean: (..., C) f32; w1, w2t: (1, C). -> (..., C) f32."""
    w1f = w1.astype(jnp.float32)
    w2f = w2t.astype(jnp.float32)
    h = jnp.maximum(jnp.sum(mean * w1f, axis=-1, keepdims=True), 0.0)   # (..., 1)
    return jax.nn.sigmoid(h * w2f)                                      # (..., C)


# ------------------------- fused single-pass kernels -------------------------


def _se_kernel_flat(x_ref, w1_ref, w2t_ref, o_ref, *, c, l):
    """Block (TB, C*L), fully dense; channel ch owns columns [ch*L, (ch+1)*L)."""
    x = x_ref[...]                                                      # (TB, C*L)
    tb = x.shape[0]
    # Per-channel mean with f32 accumulation; only the tiny scale is relaid out
    # back to the flat row layout -- x itself is multiplied and stored as loaded.
    mean = jnp.mean(x.reshape(tb, c, l), axis=-1, dtype=jnp.float32)    # (TB, C)
    s = _excitation(mean, w1_ref[...], w2t_ref[...])                    # (TB, C) f32
    s_row = jnp.broadcast_to(
        s.astype(o_ref.dtype)[:, :, None], (tb, c, l)).reshape(tb, c * l)
    o_ref[...] = x * s_row


def _se_kernel_3d(x_ref, w1_ref, w2t_ref, o_ref):
    """Block (TB, C, L): no in-kernel reshapes; used when (C, L) is tile-friendly."""
    x = x_ref[...]                                                      # (TB, C, L)
    mean = jnp.mean(x, axis=-1, dtype=jnp.float32)                      # (TB, C)
    s = _excitation(mean, w1_ref[...], w2t_ref[...])                    # (TB, C) f32
    o_ref[...] = x * s[:, :, None].astype(o_ref.dtype)


# --------------------- chunked two-pass (huge-row) kernels -------------------


def _chunk_reduce_kernel(x_ref, w1_ref, w2t_ref, s_ref, acc_ref, *, l, tl):
    """Grid (B, L-chunks): accumulate per-row channel sums, excite at the last chunk."""
    j = pl.program_id(1)

    @pl.when(j == 0)
    def _():
        acc_ref[...] = jnp.zeros_like(acc_ref)

    x = x_ref[...]                                                      # (1, C, TL)
    col = lax.broadcasted_iota(jnp.int32, x.shape, 2) + j * tl
    xz = jnp.where(col < l, x, jnp.zeros_like(x)).astype(jnp.float32)
    acc_ref[...] += jnp.sum(xz, axis=-1)                                # (1, C)

    @pl.when(j == pl.num_programs(1) - 1)
    def _():
        mean = acc_ref[...] * (1.0 / l)
        s_ref[...] = _excitation(mean, w1_ref[...], w2t_ref[...])[:, None, :]


def _chunk_scale_kernel(x_ref, s_ref, o_ref):
    o_ref[...] = x_ref[...] * s_ref[...].astype(o_ref.dtype)            # (1,C,TL)*(1,C,1)


def _se_two_pass(x, w1, w2t, block_bytes_target, vmem_limit):
    """Rows too big to keep resident: pass 1 reduce+excite, pass 2 scale (3x HBM traffic)."""
    b, c, l = x.shape
    itemsize = jnp.dtype(x.dtype).itemsize
    tl = max(128, (block_bytes_target // max(c * itemsize, 1)) // 128 * 128)
    tl = min(tl, pl.cdiv(l, 128) * 128)
    n_chunks = pl.cdiv(l, tl)

    x_spec = pl.BlockSpec((1, c, tl), lambda i, j: (i, 0, j))
    w_spec = pl.BlockSpec((1, c), lambda i, j: (0, 0))

    s = pl.pallas_call(
        functools.partial(_chunk_reduce_kernel, l=l, tl=tl),
        out_shape=jax.ShapeDtypeStruct((b, 1, c), jnp.float32),
        grid_spec=pltpu.PrefetchScalarGridSpec(
            num_scalar_prefetch=0,
            grid=(b, n_chunks),
            in_specs=[x_spec, w_spec, w_spec],
            out_specs=pl.BlockSpec((1, 1, c), lambda i, j: (i, 0, 0)),
            scratch_shapes=[pltpu.VMEM((1, c), jnp.float32)],
        ),
        compiler_params=pltpu.CompilerParams(
            dimension_semantics=("parallel", "arbitrary"),
            vmem_limit_bytes=vmem_limit,
        ),
    )(x, w1, w2t)

    s_col = jnp.transpose(s, (0, 2, 1))              # (B, C, 1); tiny, plain XLA

    return pl.pallas_call(
        _chunk_scale_kernel,
        out_shape=jax.ShapeDtypeStruct((b, c, l), x.dtype),
        grid_spec=pltpu.PrefetchScalarGridSpec(
            num_scalar_prefetch=0,
            grid=(b, n_chunks),
            in_specs=[x_spec, pl.BlockSpec((1, c, 1), lambda i, j: (i, 0, 0))],
            out_specs=x_spec,
        ),
        compiler_params=pltpu.CompilerParams(
            dimension_semantics=("parallel", "parallel"),
            vmem_limit_bytes=vmem_limit,
        ),
    )(x, s_col)


# ---------------------------------- wrapper ----------------------------------


def se_layer(x, w1, w2, *, block_bytes_target=None, max_row_bytes=None):
    """SELayer forward. x: (B, C, L); w1: (1, C); w2: (C, 1). Returns (B, C, L)."""
    b, c, l = x.shape
    assert w1.shape == (1, c) and w2.shape == (c, 1)
    itemsize = jnp.dtype(x.dtype).itemsize
    per_row = c * l * itemsize

    # Generation-aware budget: 3/4 of physical VMEM as the Mosaic scoped limit,
    # and <= ~1/8 of that per block (in + out double-buffered plus temporaries).
    vmem_limit = min((_vmem_capacity_bytes() * 3) // 4, 96 << 20)
    max_block = max(vmem_limit // 8, 1 << 20)
    if block_bytes_target is None:
        block_bytes_target = min(4 << 20, max_block)          # 1-4 MiB ~ HBM roofline
    block_bytes_target = max(1, min(block_bytes_target, max_block))
    if max_row_bytes is None:
        max_row_bytes = max_block

    w2t = jnp.reshape(w2, (1, c))     # (C,1) -> (1,C): layout plumbing in the wrapper

    if per_row > max_row_bytes:
        # Enforce the VMEM budget for huge rows instead of silently overflowing.
        return _se_two_pass(x, w1, w2t, block_bytes_target, vmem_limit)

    # -------- fused single pass: one grid axis over batch rows --------
    rows_by_bytes = max(1, block_bytes_target // per_row)
    rows_cap = max(8, pl.cdiv(b, 8))  # keep >= ~8 steps: v7x has 2 TCs + pipelining
    tb = min(b, rows_by_bytes, rows_cap)

    # Flat (TB, C*L) layout whenever the natural (C, L) tile is partially used
    # (e.g. module default C=6) and C*L is lane-dense; needs TB % 8 == 0 (or TB == B).
    use_flat = (((c % 8 != 0) or (l % 128 != 0))
                and (c * l) % 128 == 0
                and (min(b, 8) * per_row <= block_bytes_target))

    w_spec = pl.BlockSpec((1, c), lambda i: (0, 0))
    if use_flat:
        if tb < b:
            tb = max(8, (tb // 8) * 8)                # sublane-aligned (8,128) blocks
        kernel = functools.partial(_se_kernel_flat, c=c, l=l)
        x_in = x.reshape(b, c * l)                    # free: row-major metadata only
        xo_spec = pl.BlockSpec((tb, c * l), lambda i: (i, 0))
        out_shape = jax.ShapeDtypeStruct((b, c * l), x.dtype)
    else:
        kernel = _se_kernel_3d
        x_in = x
        xo_spec = pl.BlockSpec((tb, c, l), lambda i: (i, 0, 0))
        out_shape = jax.ShapeDtypeStruct((b, c, l), x.dtype)

    out = pl.pallas_call(
        kernel,
        out_shape=out_shape,
        grid_spec=pltpu.PrefetchScalarGridSpec(
            num_scalar_prefetch=0,
            grid=(pl.cdiv(b, tb),),       # ragged last block is fine: per-row math only
            in_specs=[xo_spec, w_spec, w_spec],
            out_specs=xo_spec,
        ),
        compiler_params=pltpu.CompilerParams(
            dimension_semantics=("parallel",),
            vmem_limit_bytes=vmem_limit,
        ),
    )(x_in, w1, w2t)

    return out.reshape(b, c, l) if use_flat else out


# ---------------------------------- testing ----------------------------------


def _reference(x, w1, w2):
    mean = jnp.mean(x, axis=-1)                     # (B, C)
    h = jnp.maximum(mean @ w1.T, 0.0)               # (B, 1)
    s = jax.nn.sigmoid(h @ w2.T)                    # (B, C)
    return x * s[:, :, None]


if __name__ == "__main__":
    key = jax.random.PRNGKey(0)
    kx, k1, k2 = jax.random.split(key, 3)

    # Module defaults: channel=6, num_cut=1.
    B, C, L = 2, 6, 64
    x = jax.random.normal(kx, (B, C, L), dtype=jnp.float32)
    bound = 1.0 / (C ** 0.5)
    w1 = jax.random.uniform(k1, (1, C), jnp.float32, -bound, bound)  # Linear(C, 1, bias=False)
    w2 = jax.random.uniform(k2, (C, 1), jnp.float32, -1.0, 1.0)      # Linear(1, C, bias=False)

    out = se_layer(x, w1, w2)
    jax.block_until_ready(out)
    assert out.shape == (B, C, L)
    assert jnp.allclose(out, _reference(x, w1, w2), atol=1e-5, rtol=1e-5)

    # Extra coverage: multi-step cdiv grid with a ragged batch (3D fused path, L % 128 != 0).
    x2 = jax.random.normal(kx, (13, C, 200), dtype=jnp.float32)
    out2 = se_layer(x2, w1, w2)
    jax.block_until_ready(out2)
    assert jnp.allclose(out2, _reference(x2, w1, w2), atol=1e-5, rtol=1e-5)

    # Extra coverage: force the chunked two-pass fallback (huge-row budget enforcement),
    # including a ragged last L-chunk.
    x3 = jax.random.normal(kx, (3, C, 576), dtype=jnp.float32)
    out3 = se_layer(x3, w1, w2, block_bytes_target=4096, max_row_bytes=1024)
    jax.block_until_ready(out3)
    assert jnp.allclose(out3, _reference(x3, w1, w2), atol=1e-5, rtol=1e-5)

    print("KERNEL_OK")
</pallas_src>

<mosaic_0001>
module attributes {stable_mosaic.version = 11 : i64} {
  func.func @_se_kernel_flat(%arg0: i32, %arg1: memref<2x384xf32, #tpu.memory_space<vmem>>, %arg2: memref<1x6xf32, #tpu.memory_space<vmem>>, %arg3: memref<1x6xf32, #tpu.memory_space<vmem>>, %arg4: memref<2x384xf32, #tpu.memory_space<vmem>>) attributes {dimension_semantics = [#tpu.dimension_semantics<parallel>], iteration_bounds = array<i64: 1>, scalar_prefetch = 0 : i64, scratch_operands = 0 : i64, tpu.core_type = #tpu.core_type<tc>, window_params = [{transform_indices = @transform_0, window_bounds = array<i64: 2, 384>}, {pipeline_mode = #tpu.pipeline_mode<synchronous>, transform_indices = @transform_1, window_bounds = array<i64: 1, 6>}, {pipeline_mode = #tpu.pipeline_mode<synchronous>, transform_indices = @transform_2, window_bounds = array<i64: 1, 6>}, {transform_indices = @transform_3, window_bounds = array<i64: 2, 384>}]} {
    %c0 = arith.constant 0 : index
    %c0_0 = arith.constant 0 : index
    %0 = vector.load %arg1[%c0, %c0_0] : memref<2x384xf32, #tpu.memory_space<vmem>>, vector<2x384xf32>
    %1 = vector.shape_cast %0 : vector<2x384xf32> to vector<2x6x64xf32>
    %cst = arith.constant dense<0.000000e+00> : vector<2x6xf32>
    %2 = vector.multi_reduction <add>, %1, %cst [2] : vector<2x6x64xf32> to vector<2x6xf32>
    %cst_1 = arith.constant 6.400000e+01 : f32
    %3 = vector.broadcast %cst_1 : f32 to vector<2x6xf32>
    %4 = arith.divf %2, %3 : vector<2x6xf32>
    %c0_2 = arith.constant 0 : index
    %c0_3 = arith.constant 0 : index
    %5 = vector.load %arg2[%c0_2, %c0_3] : memref<1x6xf32, #tpu.memory_space<vmem>>, vector<1x6xf32>
    %c0_4 = arith.constant 0 : index
    %c0_5 = arith.constant 0 : index
    %6 = vector.load %arg3[%c0_4, %c0_5] : memref<1x6xf32, #tpu.memory_space<vmem>>, vector<1x6xf32>
    %7 = vector.broadcast %5 : vector<1x6xf32> to vector<2x6xf32>
    %8 = arith.mulf %4, %7 : vector<2x6xf32>
    %cst_6 = arith.constant dense<0.000000e+00> : vector<2xf32>
    %9 = vector.multi_reduction <add>, %8, %cst_6 [1] : vector<2x6xf32> to vector<2xf32>
    %10 = vector.shape_cast %9 : vector<2xf32> to vector<2x1xf32>
    %cst_7 = arith.constant 0.000000e+00 : f32
    %11 = vector.broadcast %cst_7 : f32 to vector<2x1xf32>
    %12 = arith.maximumf %10, %11 : vector<2x1xf32>
    %13 = vector.broadcast %12 : vector<2x1xf32> to vector<2x6xf32>
    %14 = vector.broadcast %6 : vector<1x6xf32> to vector<2x6xf32>
    %15 = arith.mulf %13, %14 : vector<2x6xf32>
    %16 = arith.negf %15 : vector<2x6xf32>
    %17 = math.exp %16 : vector<2x6xf32>
    %cst_8 = arith.constant 1.000000e+00 : f32
    %18 = vector.broadcast %cst_8 : f32 to vector<2x6xf32>
    %19 = arith.addf %18, %17 : vector<2x6xf32>
    %20 = arith.divf %18, %19 : vector<2x6xf32>
    %21 = vector.shape_cast %20 : vector<2x6xf32> to vector<2x6x1xf32>
    %22 = vector.shape_cast %21 : vector<2x6x1xf32> to vector<2x6x1xf32>
    %23 = vector.broadcast %22 : vector<2x6x1xf32> to vector<2x6x64xf32>
    %24 = vector.shape_cast %23 : vector<2x6x64xf32> to vector<2x384xf32>
    %25 = arith.mulf %0, %24 : vector<2x384xf32>
    %c0_9 = arith.constant 0 : index
    %c0_10 = arith.constant 0 : index
    %26 = vector.load %arg4[%c0_9, %c0_10] : memref<2x384xf32, #tpu.memory_space<vmem>>, vector<2x384xf32>
    tpu.vector_store %arg4[%c0_9, %c0_10], %25 {strides = array<i32>} : memref<2x384xf32, #tpu.memory_space<vmem>>, vector<2x384xf32>,
    return
  }
  func.func @transform_0(%arg0: i32) -> (i32, i32) {
    %c0_i32 = arith.constant 0 : i32
    %c0_i32_0 = arith.constant 0 : i32
    return %arg0, %c0_i32 : i32, i32
  }
  func.func @transform_1(%arg0: i32) -> (i32, i32) {
    %c0_i32 = arith.constant 0 : i32
    %c0_i32_0 = arith.constant 0 : i32
    %c0_i32_1 = arith.constant 0 : i32
    return %c0_i32, %c0_i32_0 : i32, i32
  }
  func.func @transform_2(%arg0: i32) -> (i32, i32) {
    %c0_i32 = arith.constant 0 : i32
    %c0_i32_0 = arith.constant 0 : i32
    %c0_i32_1 = arith.constant 0 : i32
    return %c0_i32, %c0_i32_0 : i32, i32
  }
  func.func @transform_3(%arg0: i32) -> (i32, i32) {
    %c0_i32 = arith.constant 0 : i32
    %c0_i32_0 = arith.constant 0 : i32
    return %arg0, %c0_i32 : i32, i32
  }
}

</mosaic_0001>

<bundles_post_ra>
// kernel: tpu_custom_call.1
= control target key start
LH: loop header
LB: loop body
LE: loop exit
PB: predicated region body
PF: predicated region fallthrough
CT: control target
= control target key end

     0   :  { %8 = vsyncpa [#allocation3], 0  ;;  %s443_s0 = inlined_call_operand.hbm [shape: f32[2,384], index: 0, kind: input, shape index: {}]   ;;  %s444_s1 = inlined_call_operand.hbm [shape: f32[1,6], index: 1, kind: input, shape index: {}]   ;;  %s445_s2 = inlined_call_operand.vmem [shape: f32[1,6], index: 2, kind: input, shape index: {}]   ;;  %s446_s3 = inlined_call_operand.hbm [shape: f32[2,384], index: 3, kind: output, shape index: {}]  }
   0x1   :  { %9 = vsyncpa [#allocation6], 0 }
   0x2   :  { %10 = vsyncpa [#allocation4], 0  ;;  %s16_s14 = sshll.u32 %s443_s0, 4  ;;  %s370_s15 = smov [#allocation2]   ;;  %s17_s14 = int_to_ptr.hbm [resolvable:$true] %s16_s14 }
   0x3   :  { %s18_s16 = sshll.u32 %s370_s15, 4  ;;  %s27_s19 = sshll.u32 %s444_s1, 4  ;;  %s19_s16 = int_to_ptr.vmem [resolvable:$true] %s18_s16  ;;  %s28_s19 = int_to_ptr.hbm [resolvable:$true] %s27_s19 }
   0x4   :  { %21 = dma.hbm_to_vmem [thread:$0]  %s17_s14, 96, %s19_s16, [#allocation3]  }
   0x5   :  { %s371_s20 = smov [#allocation5]  }
   0x6   :  { %s29_s21 = sshll.u32 %s371_s20, 4  ;;  %s30_s21 = int_to_ptr.vmem [resolvable:$true] %s29_s21 }
   0x7   :  { %32 = dma.hbm_to_vmem [thread:$0]  %s28_s19, 16, %s30_s21, [#allocation6]  }
   0x8   :  { %364 = dma.done.wait [#allocation3], 96  }
   0x9   :  { %365 = vsyncadd [#allocation3], 4294967200 }
   0xa   :  { %366 = dma.done.wait [#allocation6], 16  }
   0xb   :  { %367 = vsyncadd [#allocation6], 4294967280  ;;  %v404_v0 = vld [vmem:[#allocation2] sm:$0x3f]  ;;  %s372_s0 = smov 64   ;;  %v122_v1 = vlaneseq  ;;  %vm57_vm0 = vcmask 1047556  }
   0xc   :  { %47 = vrot.lane.b32.xlu0 %v404_v0, %s372_s0  ;;  %v373_v3 = vmov 1934713408   ;;  %v51_v5 = vrot.slane %v404_v0, 4  ;;  %v45_v7 = vrot.slane %v404_v0, 2  ;;  %vm102_vm1 = vcmask 521216   ;;  %s259_s26 = sshll.u32 %s446_s3, 4  ;;  %s260_s26 = int_to_ptr.hbm [resolvable:$true] %s259_s26 }
   0xd   :  { %v123_v2 = vshrl.u32 %v122_v1, 7  ;;  %v60_v4 = vunpack.c.l.s4 %v373_v3  ;;  %v284_v27 = vld [vmem:[#allocation5] ss:$0 sm:$0xff]  ;;  %v374_v28 = vmov 0   ;;  %v375_v29 = vmov 64.0  }
   0xe   :  { %282 = vset.pattern.permute.xlu2 %v374_v28  ;;  %286 = vrcp.f32 %v375_v29  ;;  %v140_v44 = vand.u32 127, %v122_v1  ;;  %vm143_vm3 = vcmask 1041409   ;;  %vm146_vm4 = vcmask 41984   ;;  %v285_v50 = vld [vmem:[%s445_s2] ss:$0 sm:$0xff]  ;;  %s377_s2 = smov [#allocation7]  }
   0xf   :  { %281 = vset.pattern.permute.xlu1 %v123_v2  ;;  %283 = vset.pattern.permute.xlu0 %v123_v2  ;;  %v409_v6 = vunpack.c.0.s8 %v60_v4  ;;  %vm236_vm9 = vcmask 523264   ;;  %vm245_vm10 = vcmask 1041408   ;;  %vm247_vm11 = vcmask 1043456   ;;  %s257_s23 = sshll.u32 %s377_s2, 4  ;;  %s258_s23 = int_to_ptr.vmem [resolvable:$true] %s257_s23 }
  0x14   :  { %v287_v30 = vpop.eup %286 }
  0x15   :  { %v110_v31 = vmul.f32 64.0, %v287_v30  ;;  %vm114_vm2 = vweird.f32 %v287_v30 }
  0x17   :  { %v111_v32 = vsub.f32 1.0, %v110_v31 }
  0x19   :  { %v112_v33 = vmul.f32 %v287_v30, %v111_v32 }
  0x1b   :  { %v113_v34 = vadd.f32 %v287_v30, %v112_v33 }
  0x1d   :  { %v115_v36 = vsel %vm114_vm2, %v287_v30, %v113_v34 }
  0x7e   :  { %v48_v8 = vpop.permute.xlu0 %47 }
  0x7f   :  { %v56_v9 = vrot.slane %v48_v8, 4  ;;  %v270_v10 = vrot.slane %v48_v8, 6  ;;  %v74_v11 = vsel %vm57_vm0, %v48_v8, %v51_v5 }
  0x80   :  { %v78_v12 = vperm.slane %v74_v11, %v409_v6 }
  0x81   :  { %v58_v13 = vsel %vm57_vm0, %v56_v9, %v404_v0  ;;  %v66_v14 = vsel %vm57_vm0, %v270_v10, %v45_v7  ;;  %v376_v7 = vmov 1983009808  }
  0x82   :  { %v62_v15 = vperm.slane %v58_v13, %v409_v6  ;;  %v70_v16 = vperm.slane %v66_v14, %v409_v6  ;;  %v79_v17 = vrot.slane %v78_v12, 4  ;;  %91 = vst [vmem:[#allocation1 + $0x2] ss:$4 sm:$0xff] %v78_v12  ;;  %v189_v8 = vunpack.c.l.s4 %v376_v7 }
  0x84   :  { %v63_v18 = vrot.slane %v62_v15, 4  ;;  %v71_v19 = vrot.slane %v70_v16, 4  ;;  %v80_v20 = vsel %vm57_vm0, 0.0, %v79_v17  ;;  %87 = vst [vmem:[#allocation1] ss:$4 sm:$0xff] %v62_v15  ;;  %v190_v10 = vunpack.c.0.s8 %v189_v8 }
  0x85   :  { %89 = vst [vmem:[#allocation1 + $0x1] ss:$4 sm:$0xff] %v70_v16 }
  0x86   :  { %v64_v21 = vsel %vm57_vm0, 0.0, %v63_v18  ;;  %v72_v22 = vsel %vm57_vm0, 0.0, %v71_v19  ;;  %98 = vst [vmem:[#allocation1 + $0x22] ss:$4 sm:$0xff] %v80_v20 }
  0x87   :  { %94 = vst [vmem:[#allocation1 + $0x20] ss:$4 sm:$0xff] %v64_v21 }
  0x88   :  { %96 = vst [vmem:[#allocation1 + $0x21] ss:$4 sm:$0xff] %v72_v22 }
  0x8c   :  { %v92_v23 = vld.sshfl [vmem:[#allocation1] sm:$0xff pattern:$0x73625140] }
  0x8d   :  { %v103_v24 = vsel %vm102_vm1, %v92_v23, 0.0 }
  0x8e   :  { %104 = vadd.xlane.f32.xlu0 %v103_v24 }
  0x8f   :  { %v99_v25 = vld.sshfl [vmem:[#allocation1 + $0x20] sm:$0xff pattern:$0x73625140] }
  0x90   :  { %v106_v26 = vsel %vm102_vm1, %v99_v25, 0.0 }
  0x91   :  { %107 = vadd.xlane.f32.xlu1 %v106_v26 }
  0xaa   :  { %126 = vperm.xlu1 %281, %v284_v27  }
 0x101   :  { %v105_v37 = vpop.xlane.xlu0 %104 }
 0x102   :  { %v116_v38 = vmul.f32 %v115_v36, %v105_v37 }
 0x104   :  { %v108_v35 = vpop.xlane.xlu1 %107 }
 0x105   :  { %v117_v41 = vmul.f32 %v115_v36, %v108_v35 }
 0x11c   :  { %v127_v39 = vpop.permute.xlu1 %126 }
 0x11d   :  { %v129_v40 = vmul.f32 %v127_v39, %v116_v38  ;;  %v130_v42 = vmul.f32 %v127_v39, %v117_v41 }
 0x11f   :  { %134 = vperm.xlu2 %282, %v129_v40  }
 0x127   :  { %137 = vperm.xlu2 %282, %v130_v42  }
 0x179   :  { %v135_v43 = vpop.permute.xlu2 %134 }
 0x17a   :  { %v141_v46 = vperm.slane %v135_v43, %v140_v44 }
 0x181   :  { %v138_v45 = vpop.permute.xlu2 %137 }
 0x182   :  { %v142_v47 = vperm.slane %v138_v45, %v140_v44 }
 0x184   :  { %v144_v48 = vsel %vm143_vm3, %v142_v47, %v141_v46 }
 0x185   :  { %v147_v49 = vsel %vm146_vm4, %v144_v48, 0.0 }
 0x186   :  { %148 = vadd.xlane.f32.xlu2 %v147_v49 }
 0x1f9   :  { %v149_v51 = vpop.xlane.xlu2 %148 }
 0x1fa   :  { %v150_v52 = vmax.f32 %v149_v51, 0.0 }
 0x1fc   :  { %v154_v53 = vmul.f32 %v285_v50, %v150_v52 }
 0x1fe   :  { %v272_v54 = vmul.f32 -1.442695, %v154_v53 }
 0x200   :  { %288 = vpow2.f32 %v272_v54 }
 0x206   :  { %v289_v55 = vpop.eup %288 }
 0x207   :  { %v158_v56 = vadd.f32 1.0, %v289_v55 }
 0x209   :  { %290 = vrcp.f32 %v158_v56  ;;  %v170_v60 = vand.u32 2147483648, %v158_v56  ;;  %v168_v62 = vand.u32 2147483647, %v158_v56  ;;  %vm164_vm6 = vweird.f32 %v158_v56 }
 0x20b   :  { %v171_v1 = vor.u32 1.1754944e-38, %v170_v60  ;;  %vm169_vm8 = vcmp.eq.f32.partialorder %v168_v62, 8.507059e+37 }
 0x20f   :  { %v291_v57 = vpop.eup %290 }
 0x210   :  { %v160_v58 = vmul.f32 %v291_v57, %v158_v56  ;;  %vm165_vm5 = vweird.f32 %v291_v57 }
 0x211   :  { %vm166_vm7 = vmor %vm164_vm6, %vm165_vm5 }
 0x212   :  { %v161_v59 = vsub.f32 1.0, %v160_v58 }
 0x214   :  { %v162_v61 = vmul.f32 %v291_v57, %v161_v59 }
 0x216   :  { %v163_v63 = vadd.f32 %v291_v57, %v162_v61 }
 0x218   :  { %v167_v2 = vsel %vm166_vm7, %v291_v57, %v163_v63 }
 0x219   :  { %v172_v3 = vsel %vm169_vm8, %v171_v1, %v167_v2 }
 0x21a   :  { %v174_v4 = vperm.slane %v172_v3, 0  ;;  %v181_v5 = vperm.slane %v172_v3, 1 }
 0x21c   :  { %179 = vperm.xlu1 %281, %v174_v4  }
 0x224   :  { %186 = vperm.xlu1 %281, %v181_v5  }
 0x28e   :  { %v180_v9 = vpop.permute.xlu1 %179 }
 0x28f   :  { %v191_v11 = vperm.slane %v180_v9, %v190_v10  ;;  %v192_v13 = vrot.slane %v180_v9, 4 }
 0x291   :  { %v202_v14 = vrot.slane %v191_v11, 4  ;;  %v193_v22 = vsel %vm57_vm0, 0.0, %v192_v13 }
 0x296   :  { %v187_v12 = vpop.permute.xlu1 %186 }
 0x297   :  { %v197_v15 = vperm.slane %v187_v12, %v190_v10  ;;  %v198_v16 = vrot.slane %v187_v12, 4 }
 0x299   :  { %v199_v17 = vsel %vm57_vm0, 0.0, %v198_v16  ;;  %v200_v18 = vrot.slane %v197_v15, 4  ;;  %v203_v19 = vsel %vm57_vm0, %v197_v15, %v202_v14 }
 0x29a   :  { %v212_v20 = vrot.slane %v199_v17, 4  ;;  %v211_v21 = vperm.slane %v203_v19, %v409_v6 }
 0x29b   :  { %v201_v23 = vsel %vm57_vm0, %v200_v18, %v191_v11 }
 0x29c   :  { %v220_v24 = vrot.slane %v211_v21, 4  ;;  %v213_v25 = vsel %vm57_vm0, %v212_v20, %v193_v22  ;;  %v207_v28 = vperm.slane %v201_v23, %v409_v6 }
 0x29d   :  { %v217_v26 = vperm.slane %v213_v25, %v409_v6 }
 0x29e   :  { %v221_v27 = vsel %vm57_vm0, 0.0, %v220_v24  ;;  %v218_v31 = vrot.slane %v207_v28, 4 }
 0x29f   :  { %229 = vrot.lane.b32.xlu1 %v221_v27, %s372_s0  ;;  %v222_v29 = vrot.slane %v217_v26, 4 }
 0x2a0   :  { %v219_v32 = vsel %vm57_vm0, 0.0, %v218_v31 }
 0x2a1   :  { %v223_v30 = vsel %vm57_vm0, 0.0, %v222_v29 }
 0x2a2   :  { %233 = vrot.lane.b32.xlu0 %v223_v30, %s372_s0 }
 0x2a7   :  { %225 = vrot.lane.b32.xlu1 %v219_v32, %s372_s0 }
 0x311   :  { %v230_v33 = vpop.permute.xlu1 %229 }
 0x312   :  { %v238_v35 = vsel %vm236_vm9, %v211_v21, %v230_v33 }
 0x313   :  { %v243_v37 = vrot.slane %v238_v35, 6 }
 0x314   :  { %v234_v34 = vpop.permute.xlu0 %233 }
 0x315   :  { %v239_v36 = vsel %vm236_vm9, %v217_v26, %v234_v34 }
 0x316   :  { %v244_v38 = vrot.slane %v239_v36, 4 }
 0x319   :  { %v226_v6 = vpop.permute.xlu1 %225 }
 0x31a   :  { %v237_v39 = vsel %vm236_vm9, %v207_v28, %v226_v6 }
 0x31b   :  { %v246_v40 = vsel %vm245_vm10, %v237_v39, %v243_v37 }
 0x31c   :  { %v248_v41 = vsel %vm247_vm11, %v246_v40, %v244_v38 }
 0x31d   :  { %v250_v42 = vmul.f32 %v248_v41, %v404_v0 }
 0x31f   :  { %251 = vst [vmem:[#allocation7] sm:$0x3f] %v250_v42 }
 0x320   :  { %262 = dma.vmem_to_hbm [thread:$0]  %s258_s23, 96, %s260_s26, [#allocation4]  }
 0x321   :  { %368 = dma.done.wait [#allocation4], 96  }
 0x322   :  { %369 = vsyncadd [#allocation4], 4294967200 }
 0x323   :  { %267 = vsyncpa [#allocation3], 1 }
 0x324   :  { %268 = vsyncpa [#allocation6], 1 }
 0x325   :  { %269 = vsyncpa [#allocation4], 1 }

</bundles_post_ra>
